<compile_context>
chip_gen: v6e
topology: v6e:2x2x1
jax: 0.10.0
libtpu: 0.0.40
codegen_flags: <defaults>
</compile_context>

<pallas_src>
import functools

import jax
import jax.numpy as jnp
from jax import lax
from jax.experimental import pallas as pl
from jax.experimental.pallas import tpu as pltpu


def _topk_error_kernel(aux_ref, scores_ref, part_ref, cnt_ref, *, k, tm, tc,
                       n_total, c_total, num_c_blocks, mask_cols):
    i = pl.program_id(0)          # row block
    j = pl.program_id(1)          # class block (reduction axis)

    @pl.when(j == 0)
    def _():
        cnt_ref[...] = jnp.zeros_like(cnt_ref)

    scores = scores_ref[...]                               # (tm, tc), native dtype
    aux = aux_ref[...]                                     # (tm, 2) f32
    label_score = aux[:, 0:1].astype(scores.dtype)         # (tm, 1) native dtype
    label_idx = aux[:, 1:2].astype(jnp.int32)              # (tm, 1), exact for C < 2**24

    col = lax.broadcasted_iota(jnp.int32, (tm, tc), 1)     # class index within block
    if num_c_blocks > 1:
        col = col + j * tc                                 # global class index

    # classes ranked strictly ahead of the label (ties break toward lower index)
    ahead = (scores > label_score) | ((scores == label_score) & (col < label_idx))
    if mask_cols:
        ahead = ahead & (col < c_total)                    # class-axis remainder block
    cnt_ref[...] += jnp.sum(ahead.astype(jnp.int32), axis=-1, keepdims=True)

    @pl.when(j == num_c_blocks - 1)
    def _():
        row = lax.broadcasted_iota(jnp.int32, (tm, 1), 0) + i * tm
        hit = (cnt_ref[...] < k) & (row < n_total)          # mask row-axis remainder
        part_ref[...] = jnp.sum(hit.astype(jnp.float32)).reshape(1, 1, 1)


def _round_up(x, m):
    return ((x + m - 1) // m) * m


def _vmem_capacity_bytes():
    try:
        info = pltpu.get_tpu_info()
        cap = getattr(info, "vmem_capacity_bytes", None)
        if cap:
            return int(cap)
    except Exception:
        pass
    return 64 * 1024 * 1024       # conservative default (v7x per-core VMEM)


def topk_error(labels, outputs, *, k=1, percent=True, tm=None, tc=None):
    """labels: (N,)-like int, outputs: (N, C) float. Returns scalar error rate."""
    labels = jnp.asarray(labels).reshape(-1).astype(jnp.int32)   # squeeze-safe for N == 1
    outputs = jnp.asarray(outputs)
    if outputs.ndim != 2:
        outputs = jnp.squeeze(outputs)
    if outputs.ndim == 1:                                        # N == 1 after squeeze
        outputs = outputs[None, :]
    if not jnp.issubdtype(outputs.dtype, jnp.floating):
        outputs = outputs.astype(jnp.float32)
    n, c = outputs.shape
    scale = 100.0 if percent else 1.0
    esize = outputs.dtype.itemsize
    sub = {4: 8, 2: 16, 1: 32}.get(esize, 8)                     # sublane multiple per dtype

    # ---- per-generation VMEM budget: 128 MiB chips (v5e/v6e) -> 96 MiB, v7x 64 MiB -> 48 MiB
    vmem_limit = min(int(_vmem_capacity_bytes() * 0.75), 96 * 1024 * 1024)
    usable = int(vmem_limit * 0.8)            # headroom for aux tiles, scratch, compiler temps

    # ---- class-axis tile: full C when a >=256-row double-buffered tile fits, else tile C
    c_lanes = _round_up(c, 128)
    if tc is None:
        if 2 * 256 * c_lanes * esize <= usable:
            tc = c                                               # single class block
        else:
            tc = max(128, ((usable // (2 * 256 * esize)) // 128) * 128)
    tc = min(tc, c)
    if tc < c:
        tc = max(128, (tc // 128) * 128)                         # partial blocks: 128-multiple
    num_c_blocks = -(-c // tc)
    mask_cols = (num_c_blocks * tc) != c
    tcl = _round_up(tc, 128)

    # ---- row tile: biggest that fits the budget, capped for megacore balance
    aux_row_bytes = 512                                          # (tm, 2) f32 pads to 128 lanes
    if tm is None:
        tm = usable // (2 * tcl * esize + 3 * aux_row_bytes)
        tm = min(tm, 2048)
    tm = max(sub, (tm // sub) * sub)
    tm = min(tm, max(sub, _round_up(-(-n // 4), sub)))           # keep >= ~4 row blocks
    num_rb = -(-n // tm)
    n_pad = num_rb * tm

    # ---- pre-gather the label's own score; pack [label_score, label_idx] as f32 aux
    label_score = jnp.take_along_axis(outputs, labels[:, None], axis=-1)     # (n, 1)
    aux = jnp.zeros((n_pad, 2), jnp.float32)
    aux = aux.at[:n, 0].set(label_score[:, 0].astype(jnp.float32))
    aux = aux.at[:n, 1].set(labels.astype(jnp.float32))          # exact for C < 2**24

    kernel = functools.partial(
        _topk_error_kernel, k=int(k), tm=tm, tc=tc, n_total=n, c_total=c,
        num_c_blocks=num_c_blocks, mask_cols=mask_cols)

    # TODO(synk): lane-dense (num_rb, tm) label layout (needs an in-kernel row->column
    # relayout) and C<128 row-repacking would shave the remaining aux / lane padding.
    # TODO(synk): pl.Buffered(3) on the score spec when vocab-scale C forces tm to 8-16
    # rows, budget permitting.
    partials = pl.pallas_call(
        kernel,
        out_shape=jax.ShapeDtypeStruct((num_rb, 1, 1), jnp.float32),
        grid_spec=pltpu.PrefetchScalarGridSpec(
            num_scalar_prefetch=0,
            grid=(num_rb, num_c_blocks),
            in_specs=[
                pl.BlockSpec((tm, 2), lambda i, j: (i, 0)),      # aux: label score + index
                pl.BlockSpec((tm, tc), lambda i, j: (i, j)),     # scores, native dtype
            ],
            out_specs=pl.BlockSpec((1, 1, 1), lambda i, j: (i, 0, 0)),
            scratch_shapes=[pltpu.VMEM((tm, 1), jnp.int32)],     # running rank count
        ),
        compiler_params=pltpu.CompilerParams(
            dimension_semantics=("parallel", "arbitrary"),
            vmem_limit_bytes=vmem_limit,
        ),
    )(aux, outputs)

    acc = jnp.sum(partials) / jnp.float32(n)
    return (1.0 - acc) * jnp.float32(scale)


if __name__ == "__main__":
    key = jax.random.PRNGKey(0)

    def _reference(labels, outputs, k, percent):
        _, topk_idx = lax.top_k(outputs, k)
        hits = jnp.any(topk_idx == labels[:, None], axis=-1).astype(jnp.float32)
        s = 100.0 if percent else 1.0
        return s * (1.0 - jnp.mean(hits))

    k1, k2, k3, k4 = jax.random.split(key, 4)

    # case 1: f32 logits; N not a multiple of the row tile (exercises row masking)
    N1, C1, K1 = 20, 32, 3
    out1 = jax.random.normal(k1, (N1, C1), dtype=jnp.float32)
    lab1 = jax.random.randint(k2, (N1,), 0, C1, dtype=jnp.int32)
    err1 = jax.block_until_ready(topk_error(lab1, out1, k=K1, percent=True))
    ref1 = _reference(lab1, out1, K1, True)
    assert abs(float(err1) - float(ref1)) < 1e-3, (float(err1), float(ref1))

    # case 2: bf16 logits streamed in native dtype; C not a multiple of 128
    N2, C2, K2 = 24, 200, 5
    out2 = jax.random.normal(k3, (N2, C2), dtype=jnp.float32).astype(jnp.bfloat16)
    lab2 = jax.random.randint(k4, (N2,), 0, C2, dtype=jnp.int32)
    err2 = jax.block_until_ready(topk_error(lab2, out2, k=K2, percent=False))
    ref2 = _reference(lab2, out2, K2, False)
    assert abs(float(err2) - float(ref2)) < 1e-3, (float(err2), float(ref2))

    print("KERNEL_OK")
</pallas_src>

<mosaic_0001>
module attributes {stable_mosaic.version = 11 : i64} {
  func.func @_topk_error_kernel(%arg0: i32, %arg1: i32, %arg2: memref<8x2xf32, #tpu.memory_space<vmem>>, %arg3: memref<8x32xf32, #tpu.memory_space<vmem>>, %arg4: memref<1x1x1xf32, #tpu.memory_space<vmem>>, %arg5: memref<8x1xi32, #tpu.memory_space<vmem>>) attributes {dimension_semantics = [#tpu.dimension_semantics<parallel>, #tpu.dimension_semantics<arbitrary>], iteration_bounds = array<i64: 3, 1>, scalar_prefetch = 0 : i64, scratch_operands = 1 : i64, tpu.core_type = #tpu.core_type<tc>, window_params = [{transform_indices = @transform_0, window_bounds = array<i64: 8, 2>}, {transform_indices = @transform_1, window_bounds = array<i64: 8, 32>}, {transform_indices = @transform_2, window_bounds = array<i64: 1, 1, 1>}]} {
    %c0_i32 = arith.constant 0 : i32
    %0 = arith.cmpi eq, %arg1, %c0_i32 : i32
    %1 = arith.extui %0 : i1 to i32
    %c0_i32_0 = arith.constant 0 : i32
    %2 = arith.cmpi ne, %1, %c0_i32_0 : i32
    scf.if %2 {
      %c0_i32_10 = arith.constant 0 : i32
      %26 = vector.broadcast %c0_i32_10 : i32 to vector<8x1xi32>
      %c0_11 = arith.constant 0 : index
      %c0_12 = arith.constant 0 : index
      %27 = vector.load %arg5[%c0_11, %c0_12] : memref<8x1xi32, #tpu.memory_space<vmem>>, vector<8x1xi32>
      tpu.vector_store %arg5[%c0_11, %c0_12], %26 {strides = array<i32>} : memref<8x1xi32, #tpu.memory_space<vmem>>, vector<8x1xi32>,
    } else {
    }
    %c0 = arith.constant 0 : index
    %c0_1 = arith.constant 0 : index
    %3 = vector.load %arg3[%c0, %c0_1] : memref<8x32xf32, #tpu.memory_space<vmem>>, vector<8x32xf32>
    %c0_2 = arith.constant 0 : index
    %c0_3 = arith.constant 0 : index
    %4 = vector.load %arg2[%c0_2, %c0_3] : memref<8x2xf32, #tpu.memory_space<vmem>>, vector<8x2xf32>
    %5 = vector.extract_strided_slice %4 {offsets = [0, 0], sizes = [8, 1], strides = [1, 1]} : vector<8x2xf32> to vector<8x1xf32>
    %6 = vector.extract_strided_slice %4 {offsets = [0, 1], sizes = [8, 1], strides = [1, 1]} : vector<8x2xf32> to vector<8x1xf32>
    %7 = arith.fptosi %6 : vector<8x1xf32> to vector<8x1xi32>
    %8 = tpu.iota {dimensions = array<i32: 1>} : vector<8x32xi32>
    %9 = vector.broadcast %5 : vector<8x1xf32> to vector<8x32xf32>
    %10 = arith.cmpf ogt, %3, %9 : vector<8x32xf32>
    %11 = vector.broadcast %5 : vector<8x1xf32> to vector<8x32xf32>
    %12 = arith.cmpf oeq, %3, %11 : vector<8x32xf32>
    %13 = vector.broadcast %7 : vector<8x1xi32> to vector<8x32xi32>
    %14 = arith.cmpi slt, %8, %13 : vector<8x32xi32>
    %15 = arith.andi %12, %14 : vector<8x32xi1>
    %16 = arith.ori %10, %15 : vector<8x32xi1>
    %c0_4 = arith.constant 0 : index
    %c0_5 = arith.constant 0 : index
    %17 = vector.load %arg5[%c0_4, %c0_5] : memref<8x1xi32, #tpu.memory_space<vmem>>, vector<8x1xi32>
    %18 = arith.extui %16 : vector<8x32xi1> to vector<8x32xi32>
    %cst = arith.constant dense<0> : vector<8xi32>
    %19 = vector.multi_reduction <add>, %18, %cst [1] : vector<8x32xi32> to vector<8xi32>
    %20 = vector.shape_cast %19 : vector<8xi32> to vector<8x1xi32>
    %21 = arith.addi %17, %20 : vector<8x1xi32>
    %c0_6 = arith.constant 0 : index
    %c0_7 = arith.constant 0 : index
    %22 = vector.load %arg5[%c0_6, %c0_7] : memref<8x1xi32, #tpu.memory_space<vmem>>, vector<8x1xi32>
    tpu.vector_store %arg5[%c0_6, %c0_7], %21 {strides = array<i32>} : memref<8x1xi32, #tpu.memory_space<vmem>>, vector<8x1xi32>,
    %c0_i32_8 = arith.constant 0 : i32
    %23 = arith.cmpi eq, %arg1, %c0_i32_8 : i32
    %24 = arith.extui %23 : i1 to i32
    %c0_i32_9 = arith.constant 0 : i32
    %25 = arith.cmpi ne, %24, %c0_i32_9 : i32
    scf.if %25 {
      %26 = tpu.iota {dimensions = array<i32: 0>} : vector<8x1xi32>
      %c8_i32 = arith.constant 8 : i32
      %27 = arith.muli %arg0, %c8_i32 : i32
      %28 = vector.broadcast %27 : i32 to vector<8x1xi32>
      %29 = arith.addi %26, %28 : vector<8x1xi32>
      %c0_10 = arith.constant 0 : index
      %c0_11 = arith.constant 0 : index
      %30 = vector.load %arg5[%c0_10, %c0_11] : memref<8x1xi32, #tpu.memory_space<vmem>>, vector<8x1xi32>
      %c3_i32 = arith.constant 3 : i32
      %31 = vector.broadcast %c3_i32 : i32 to vector<8x1xi32>
      %32 = arith.cmpi slt, %30, %31 : vector<8x1xi32>
      %c20_i32 = arith.constant 20 : i32
      %33 = vector.broadcast %c20_i32 : i32 to vector<8x1xi32>
      %34 = arith.cmpi slt, %29, %33 : vector<8x1xi32>
      %35 = arith.andi %32, %34 : vector<8x1xi1>
      %36 = arith.extui %35 : vector<8x1xi1> to vector<8x1xi32>
      %37 = arith.sitofp %36 : vector<8x1xi32> to vector<8x1xf32>
      %38 = vector.shape_cast %37 : vector<8x1xf32> to vector<1x8x1xf32>
      %cst_12 = arith.constant dense<0.000000e+00> : vector<1xf32>
      %39 = vector.multi_reduction <add>, %38, %cst_12 [1, 2] : vector<1x8x1xf32> to vector<1xf32>
      %40 = vector.shape_cast %39 : vector<1xf32> to vector<1x1x1xf32>
      %41 = vector.extract %40[0, 0, 0] : f32 from vector<1x1x1xf32>
      %42 = vector.broadcast %41 : f32 to vector<1x1x1xf32>
      %c0_13 = arith.constant 0 : index
      %c0_14 = arith.constant 0 : index
      %c0_15 = arith.constant 0 : index
      %43 = vector.load %arg4[%c0_13, %c0_14, %c0_15] : memref<1x1x1xf32, #tpu.memory_space<vmem>>, vector<1x1x1xf32>
      tpu.vector_store %arg4[%c0_13, %c0_14, %c0_15], %42 {strides = array<i32>} : memref<1x1x1xf32, #tpu.memory_space<vmem>>, vector<1x1x1xf32>,
    } else {
    }
    return
  }
  func.func @transform_0(%arg0: i32, %arg1: i32) -> (i32, i32) {
    %c0_i32 = arith.constant 0 : i32
    %c0_i32_0 = arith.constant 0 : i32
    return %arg0, %c0_i32 : i32, i32
  }
  func.func @transform_1(%arg0: i32, %arg1: i32) -> (i32, i32) {
    %c0_i32 = arith.constant 0 : i32
    return %arg0, %arg1 : i32, i32
  }
  func.func @transform_2(%arg0: i32, %arg1: i32) -> (i32, i32, i32) {
    %c0_i32 = arith.constant 0 : i32
    %c0_i32_0 = arith.constant 0 : i32
    %c0_i32_1 = arith.constant 0 : i32
    return %arg0, %c0_i32, %c0_i32_0 : i32, i32, i32
  }
}

</mosaic_0001>

<bundles_post_ra>
// kernel: tpu_custom_call.1
= control target key start
LH: loop header
LB: loop body
LE: loop exit
PB: predicated region body
PF: predicated region fallthrough
CT: control target
= control target key end

     0   :  { %s403_s9 = smov 0   ;;  %s405_s10 = smov 0   ;;  %s451_s0 = inlined_call_operand.vmem [shape: f32[24,2], index: 0, kind: input, shape index: {}]   ;;  %s452_s1 = inlined_call_operand.vmem [shape: f32[20,32], index: 1, kind: input, shape index: {}]   ;;  %s453_s2 = inlined_call_operand.vmem [shape: f32[3,1,1], index: 2, kind: output, shape index: {}]  }
   0x1   :  { %s407_s11 = smov 0  }
   0x2 LB: > { %s24_s12 = sadd.s32 1, %s379_s10  ;;  %p321_p0 = scmp.ge.s32.totalorder %s383_s11, 1  ;;  %s383_s11 = sphi %s407_s11, %s12_s11   ;;  %s379_s10 = sphi %s405_s10, %s455_s10   ;;  %s375_s9 = sphi %s403_s9, %s454_s9  }
   0x3   : > { %p26_p1 = scmp.ge.s32.totalorder %s24_s12, 3  ;;  %p137_p2 = scmp.lt.s32.totalorder %s383_s11, 4 }
   0x5   : > { %s457_s12 = smov (%p26_p1, %s24_s12), 0  ;;  %p138_p3 = pnand %p321_p0, %p137_p2 }
   0x6   : > { %p163_p4 = scmp.lt.s32.totalorder (!%p138_p3), %s375_s9, 2  ;;  %s324_s21 = sshll.u32 (!%p138_p3), %s375_s9, 3 }
   0x7   : > { %141 = sbr.rel (%p138_p3) target bundleno = 517 (0x205), region = 28 }
   0xc   : > { %v385_v0 = vmov 0   ;;  %s425_s13 = scalar_select %p163_p4, %s375_s9, 2  ;;  %v386_v4 = vmov 1   ;;  %v186_v5 = vlaneseq  ;;  %vm203_vm4 = vcmask 261120  }
   0xd   : > { %359 = vset.pattern.permute.xlu0 %v385_v0  ;;  %vm181_vm6 = vcmask 7168   ;;  %v226_v25 = vstv %s324_s21  ;;  %v387_v28 = vmov 0.0   ;;  %vm245_vm10 = vcmask 0  }
   0xe   : > { %s322_s14 = sshll.u32 %s425_s13, 3  ;;  %v187_v7 = vand.u32 127, %v186_v5  ;;  %182 = vst.msk [vmem:[#allocation2] sm:$0xff] %vm181_vm6, %v385_v0  ;;  %v224_v24 = vshrl.u32 %v186_v5, 7  ;;  %s176_s24 = scalar_lea.vmem %s453_s2, %s425_s13 }
   0xf   : > { %s166_s17 = scalar_lea.vmem %s451_s0, %s322_s14  ;;  %s173_s20 = scalar_lea.vmem %s452_s1, %s322_s14 }
  0x10   : > { %v184_v1 = vld [vmem:[%s166_s17] sm:$0xff]  ;;  %v227_v26 = vadd.s32 %v226_v25, %v224_v24 }
  0x11   : > { %190 = vperm.xlu0 %359, %v184_v1   ;;  %v328_v2 = vtrunc.f32 %v184_v1  ;;  %v183_v8 = vld [vmem:[%s173_s20] sm:$0xff] }
  0x12   : > { %vm230_vm7 = vcmp.lt.s32.totalorder %v227_v26, 20 }
  0x13   : > { %v329_v3 = vcvt.f32.s32 %v328_v2 }
  0x15   : > { %360 = vset.pattern.permute.xlu0 %v386_v4  ;;  %v201_v21 = vld [vmem:[#allocation2] sm:$0xff] }
  0x16   : > { %196 = vperm.xlu0 %360, %v329_v3  }
  0x8c   : > { %v191_v6 = vpop.permute.xlu0 %190 }
  0x8d   : > { %vm194_vm0 = vcmp.eq.f32.partialorder %v183_v8, %v191_v6  ;;  %vm193_vm2 = vcmp.gt.f32.partialorder %v183_v8, %v191_v6 }
  0x91   : > { %v197_v9 = vpop.permute.xlu0 %196 }
  0x92   : > { %vm198_vm1 = vcmp.lt.s32.totalorder %v187_v7, %v197_v9 }
  0x93   : > { %vm199_vm3 = vmand %vm194_vm0, %vm198_vm1 }
  0x94   : > { %vm200_vm5 = vmor %vm193_vm2, %vm199_vm3 }
  0x95   : > { %v202_v10 = vsel %vm200_vm5, 1, %v385_v0 }
  0x96   : > { %v204_v11 = vsel %vm203_vm4, %v202_v10, 0 }
  0x97   : > { %v206_v12 = vshrl.u32 %v204_v11, 16  ;;  %v205_v14 = vand.u32 65535, %v204_v11 }
  0x99   : > { %v208_v13 = vcvt.s32.f32 %v206_v12  ;;  %v207_v15 = vcvt.s32.f32 %v205_v14 }
  0x9b   : > { %211 = vadd.xlane.f32.xlu1 %v208_v13 }
  0x9f   : > { %209 = vadd.xlane.f32.xlu1 %v207_v15 }
 0x124   : > { %v212_v16 = vpop.xlane.xlu1 %211 }
 0x125   : > { %v214_v17 = vcvt.f32.s32 %v212_v16 }
 0x127   : > { %v215_v19 = vshll.u32 %v214_v17, 16 }
 0x128   : > { %v210_v18 = vpop.xlane.xlu1 %209 }
 0x129   : > { %v213_v20 = vcvt.f32.s32 %v210_v18 }
 0x12b   : > { %v216_v22 = vadd.s32 %v215_v19, %v213_v20 }
 0x12d   : > { %v217_v23 = vadd.s32 %v216_v22, %v201_v21 }
 0x12f   : > { %219 = vst.msk [vmem:[#allocation2] sm:$0xff] %vm181_vm6, %v217_v23 }
 0x136   : > { %v228_v27 = vld [vmem:[#allocation2] sm:$0xff] }
 0x137   : > { %vm229_vm8 = vcmp.lt.s32.totalorder %v228_v27, 3 }
 0x138   : > { %vm231_vm9 = vmand %vm229_vm8, %vm230_vm7 }
 0x139   : > { %v325_v29 = vsel %vm231_vm9, 1.0, %v387_v28 }
 0x13a   : > { %v234_v30 = vsel %vm181_vm6, %v325_v29, 0.0 }
 0x13b   : > { %235 = vadd.xlane.f32.xlu1 %v234_v30 }
 0x1c4   : > { %v236_v31 = vpop.xlane.xlu1 %235 }
 0x1c5   : > { %v237_v32 = vrot.slane %v236_v31, 4 }
 0x1c7   : > { %v238_v33 = vadd.f32 %v237_v32, %v236_v31 }
 0x1c9   : > { %v239_v34 = vrot.slane %v238_v33, 2 }
 0x1cb   : > { %v240_v35 = vadd.f32 %v239_v34, %v238_v33 }
 0x1cd   : > { %v241_v36 = vrot.slane %v240_v35, 1 }
 0x1cf   : > { %v242_v37 = vadd.f32 %v241_v36, %v240_v35 }
 0x1d1   : > { %330 = vpush %v242_v37 }
 0x202   : > { %s331_s25 = spop %330 }
 0x203   : > { %v244_v38 = vstv %s331_s25 }
 0x204   : > { %246 = vst.msk [vmem:[%s176_s24] sm:$0x1] %vm245_vm10, %v244_v38 }
 0x205 PF: > { %s12_s11 = sadd.s32 1, %s383_s11   ;;  %s454_s9 = smov %s379_s10 }
 0x206   : > { %p9_p5 = scmp.ge.s32.totalorder %s12_s11, 5   ;;  %s455_s10 = smov %s457_s12 }
 0x208   :  { %11 = sbr.rel (!%p9_p5) target bundleno = 2 (0x2), region = 69 }

</bundles_post_ra>
